<compile_context>
chip_gen: v7x
topology: tpu7x:2x2x1
jax: 0.10.0
libtpu: 0.0.40
codegen_flags: <defaults>
</compile_context>

<pallas_src>
import functools

import jax
import jax.numpy as jnp
from jax.experimental import pallas as pl
from jax.experimental.pallas import tpu as pltpu


def _round_up(n, m):
    return ((n + m - 1) // m) * m


# ---------------------------------------------------------------------------
# Kernel
# ---------------------------------------------------------------------------
def ensemble_kernel(x_ref, w_ab_ref, b_ab_ref, wc_ref, bc_ref, out_ref, *,
                    reduce_axis):
    # Global-average pool (the 1/HW scale is folded into w_ab).  The f32
    # upcast is fused into the reduction so a bf16 input tile never gets a
    # materialized f32 twin in VMEM; accumulation stays f32 (v5e-safe).
    pooled = jnp.sum(x_ref[...], axis=reduce_axis, dtype=jnp.float32)  # (TB, C)

    # Fused backbone heads: (TB, C) @ (C, Fpad) + (1, Fpad)   [wa || wb]
    h = jnp.dot(pooled, w_ab_ref[...], preferred_element_type=jnp.float32)
    h = jnp.maximum(h + b_ab_ref[...], 0.0)           # relu(cat([x1, x2], 1))

    # Classifier: (TB, Fpad) @ (Fpad, Opad) + (1, Opad)
    out = jnp.dot(h, wc_ref[...], preferred_element_type=jnp.float32) + bc_ref[...]
    # Note: when B % TB != 0 the padded tail rows compute on unspecified data;
    # those rows are never written back to the (B, Opad) output (benign).
    out_ref[...] = out.astype(out_ref.dtype)


# ---------------------------------------------------------------------------
# VMEM planning
# ---------------------------------------------------------------------------
def _physical_vmem_bytes():
    try:
        info = pltpu.get_tpu_info()
        v = int(getattr(info, "vmem_capacity_bytes", 0))
        if v > 0:
            return v
    except Exception:
        pass
    return 64 * 1024 * 1024          # conservative fallback (v7x per-TC VMEM)


def _vmem_plan(B, C, HW, x_itemsize, Fpad, Opad, channels_last, const_bufs):
    """Honest VMEM accounting -> (batch tile TB, vmem_limit_bytes)."""
    phys = _physical_vmem_bytes()
    cap = (phys * 3) // 4            # ~48 MiB on v7x (64), ~96 MiB on v5e/v6e (128)

    sub = 8 * (4 // x_itemsize)      # sublane packing: 8 rows f32, 16 rows bf16
    if channels_last:                # x block (TB, HW, C): HW on sublanes, C on lanes
        x_row = _round_up(HW, sub) * _round_up(C, 128) * x_itemsize
    else:                            # x block (TB, C, HW): C on sublanes, HW on lanes
        x_row = _round_up(C, sub) * _round_up(HW, 128) * x_itemsize

    # Per-batch-row resident bytes: double-buffered x block, (TB, Fpad) f32 `h`
    # intermediate between the two matmuls, double-buffered f32 out block.
    per_row = 2 * x_row + Fpad * 4 + 2 * Opad * 4
    # Grid-invariant operands (1 buffer if single-buffered, else 2).
    const = const_bufs * (_round_up(C, 8) * Fpad + 8 * Fpad
                          + Fpad * Opad + 8 * Opad) * 4
    slack = 2 * 1024 * 1024          # compiler-internal scratch headroom

    tb_budget = max(8, (cap - const - slack) // per_row)
    # Keep >= 4 grid steps when B allows it: shards the batch axis across the
    # two v7x TensorCores and gives the DMA pipeline something to overlap.
    tb_target = _round_up(pl.cdiv(B, 4), 8)
    tb = min(tb_budget, tb_target)
    tb = max(8, (tb // 8) * 8)
    if tb >= B:
        tb = B                       # tiny batch: one full block (always legal)

    used = const + tb * per_row + slack
    vmem_limit = max(16 << 20, min(cap, _round_up(used, 1 << 20) + (4 << 20)))
    return tb, int(vmem_limit)


# ---------------------------------------------------------------------------
# pallas_call builder
# ---------------------------------------------------------------------------
def _build_call(B, C, HW, TB, Fpad, Opad, out_dtype, channels_last,
                single_buffer_consts, vmem_limit, cost):
    if channels_last:
        x_block = (TB, HW, C)
        reduce_axis = -2             # pool over HW (sublanes), C stays on lanes
    else:
        x_block = (TB, C, HW)
        reduce_axis = -1             # pool over HW (lanes)

    const_kw = {}
    if single_buffer_consts:
        # Grid-invariant operands are fetched once (constant index_map); drop
        # their never-used second pipeline buffer to free VMEM for a larger TB.
        const_kw = dict(pipeline_mode=pl.Buffered(1))

    kernel = functools.partial(ensemble_kernel, reduce_axis=reduce_axis)
    return pl.pallas_call(
        kernel,
        out_shape=jax.ShapeDtypeStruct((B, Opad), out_dtype),
        grid=(pl.cdiv(B, TB),),
        in_specs=[
            pl.BlockSpec(x_block, lambda i: (i, 0, 0)),            # x: batch-tiled
            pl.BlockSpec((C, Fpad), lambda i: (0, 0), **const_kw),  # fused head W
            pl.BlockSpec((1, Fpad), lambda i: (0, 0), **const_kw),  # fused head b
            pl.BlockSpec((Fpad, Opad), lambda i: (0, 0), **const_kw),  # classifier W
            pl.BlockSpec((1, Opad), lambda i: (0, 0), **const_kw),  # classifier b
        ],
        out_specs=pl.BlockSpec((TB, Opad), lambda i: (i, 0)),
        compiler_params=pltpu.CompilerParams(
            dimension_semantics=("parallel",),   # batch axis shards across v7x TCs
            vmem_limit_bytes=vmem_limit,
        ),
        cost_estimate=cost,
    )


# ---------------------------------------------------------------------------
# Public wrapper
# ---------------------------------------------------------------------------
def ensemble_forward(x, params, *, channels_last=False, out_dtype=jnp.float32):
    """Forward of EnsembleModel_v3.

    x: [B, C, H, W] (channels_last=False) or [B, H, W, C] (channels_last=True).
       The kernel consumes x in whatever dtype it arrives.  Recommended
       default for real workloads: feed bf16 (cast in the *producer* of x, not
       here -- a standalone wrapper cast would be an extra HBM pass).  The
       channels-last layout is preferred when HW is small and C large
       (e.g. 7x7x2048 feature maps) so x tiles stay lane-dense.
    Returns [B, FB] in out_dtype.
    """
    if channels_last:
        B, H, W, C = x.shape
    else:
        B, C, H, W = x.shape
    HW = H * W

    wa, ba, wb, bb, wc, bc = (params["wa"], params["ba"], params["wb"],
                              params["bb"], params["wc"], params["bc"])
    FA, FB = wa.shape[1], wb.shape[1]
    F = FA + FB
    Fpad = _round_up(F, 128)         # fused head width, lane-dense
    Opad = _round_up(FB, 128)        # classifier output width, lane-dense

    # Trace-time prep of the frozen weights: fuse the two heads (wa || wb),
    # fold the 1/(H*W) mean into the fused weight, zero-pad to lane-dense
    # widths.  (Weights stay f32; they are VMEM-resident and tiny vs x traffic.)
    inv_hw = jnp.float32(1.0 / HW)
    w_ab = jnp.concatenate([wa, wb], axis=1).astype(jnp.float32) * inv_hw
    b_ab = jnp.concatenate([ba, bb], axis=1).astype(jnp.float32)
    w_ab = jnp.pad(w_ab, ((0, 0), (0, Fpad - F)))
    b_ab = jnp.pad(b_ab, ((0, 0), (0, Fpad - F)))
    wc_p = jnp.pad(wc.astype(jnp.float32), ((0, Fpad - F), (0, Opad - FB)))
    bc_p = jnp.pad(bc.astype(jnp.float32), ((0, 0), (0, Opad - FB)))

    x3 = x.reshape(B, HW, C) if channels_last else x.reshape(B, C, HW)
    x_itemsize = jnp.dtype(x3.dtype).itemsize

    cost = pl.CostEstimate(
        flops=int(B * C * HW + 2 * B * C * Fpad + 2 * B * Fpad * Opad),
        transcendentals=0,
        bytes_accessed=int(B * C * HW * x_itemsize
                           + (C * Fpad + Fpad + Fpad * Opad + Opad) * 4
                           + B * Opad * jnp.dtype(out_dtype).itemsize),
    )

    # Prefer single-buffered constant operands; fall back to default double
    # buffering (with matching VMEM accounting) if pl.Buffered(1) is rejected
    # by this jax version's lowering.
    last_err = None
    out_padded = None
    for single_buffer_consts in (True, False):
        TB, vmem_limit = _vmem_plan(
            B, C, HW, x_itemsize, Fpad, Opad, channels_last,
            const_bufs=1 if single_buffer_consts else 2)
        call = _build_call(B, C, HW, TB, Fpad, Opad, out_dtype, channels_last,
                           single_buffer_consts, vmem_limit, cost)
        try:
            out_padded = call(x3, w_ab, b_ab, wc_p, bc_p)
            break
        except Exception as e:                    # lowering fallback path
            last_err = e
    if out_padded is None:
        raise last_err

    # TODO(synk): for very large B, return the padded (B, Opad) slab and fold
    # this slice into the consumer to skip one small extra HBM round trip.
    return out_padded[:, :FB]


# ---------------------------------------------------------------------------
# Pure-JAX reference + param construction
# ---------------------------------------------------------------------------
def reference_forward(x, params, *, channels_last=False):
    """Mirrors the PyTorch forward semantics (f32 accumulation)."""
    if channels_last:
        B, H, W, C = x.shape
        pooled = jnp.mean(x.reshape(B, H * W, C).astype(jnp.float32), axis=1)
    else:
        B, C, H, W = x.shape
        pooled = jnp.mean(x.reshape(B, C, H * W).astype(jnp.float32), axis=-1)
    x1 = pooled @ params["wa"] + params["ba"]            # modelA(x.clone())
    x2 = pooled @ params["wb"] + params["bb"]            # modelB(x)
    cat = jnp.concatenate([x1, x2], axis=1)              # torch.cat(dim=1)
    return jax.nn.relu(cat) @ params["wc"] + params["bc"]


def make_params(key, C, FA, FB):
    k = jax.random.split(key, 6)
    return {
        # backbone A head: Linear(C -> FA)
        "wa": jax.random.normal(k[0], (C, FA), jnp.float32) * 0.1,
        "ba": jax.random.normal(k[1], (1, FA), jnp.float32) * 0.01,
        # backbone B head: Linear(C -> FB)
        "wb": jax.random.normal(k[2], (C, FB), jnp.float32) * 0.1,
        "bb": jax.random.normal(k[3], (1, FB), jnp.float32) * 0.01,
        # classifier: Linear(FA + FB -> FB)
        "wc": jax.random.normal(k[4], (FA + FB, FB), jnp.float32) * 0.1,
        "bc": jax.random.normal(k[5], (1, FB), jnp.float32) * 0.01,
    }
    # TODO(synk): aux_logits flag of Inception-style backbones has no effect in
    # inference forward; not modeled.


if __name__ == "__main__":
    B, C, H, W = 2, 4, 16, 16   # input NCHW
    FA, FB = 32, 16             # modelA_output_features, modelB_output_features

    key = jax.random.PRNGKey(0)
    kx, kp = jax.random.split(key)
    x = jax.random.normal(kx, (B, C, H, W), jnp.float32)
    params = make_params(kp, C, FA, FB)

    # 1) f32 NCHW path: exact match against the pure-JAX reference.
    out = jax.block_until_ready(ensemble_forward(x, params))
    ref = reference_forward(x, params)
    assert out.shape == (B, FB), out.shape
    assert jnp.allclose(out, ref, atol=1e-5, rtol=1e-5), \
        f"max err {jnp.max(jnp.abs(out - ref))}"

    # 2) bf16-input path (recommended default for real workloads; here the
    #    cast stands in for the producer emitting bf16 directly).
    x_bf16 = x.astype(jnp.bfloat16)
    out_bf16 = jax.block_until_ready(ensemble_forward(x_bf16, params))
    ref_bf16 = reference_forward(x_bf16, params)
    assert jnp.allclose(out_bf16, ref_bf16, atol=1e-3, rtol=1e-3), \
        f"max err {jnp.max(jnp.abs(out_bf16 - ref_bf16))}"

    # 3) channels-last path (preferred when HW is small and C large, e.g.
    #    7x7x2048 backbone feature maps): exercises the sublane-reduce kernel.
    x_nhwc = jnp.transpose(x, (0, 2, 3, 1))
    out_cl = jax.block_until_ready(
        ensemble_forward(x_nhwc, params, channels_last=True))
    assert jnp.allclose(out_cl, ref, atol=1e-5, rtol=1e-5), \
        f"max err {jnp.max(jnp.abs(out_cl - ref))}"

    print("KERNEL_OK")
</pallas_src>

<mosaic_0001>
module attributes {stable_mosaic.version = 11 : i64} {
  func.func @ensemble_kernel(%arg0: i32, %arg1: memref<2x4x256xf32, #tpu.memory_space<vmem>>, %arg2: memref<4x128xf32, #tpu.memory_space<vmem>>, %arg3: memref<1x128xf32, #tpu.memory_space<vmem>>, %arg4: memref<128x128xf32, #tpu.memory_space<vmem>>, %arg5: memref<1x128xf32, #tpu.memory_space<vmem>>, %arg6: memref<2x128xf32, #tpu.memory_space<vmem>>) attributes {dimension_semantics = [#tpu.dimension_semantics<parallel>], iteration_bounds = array<i64: 1>, scalar_prefetch = 0 : i64, scratch_operands = 0 : i64, tpu.core_type = #tpu.core_type<tc>, window_params = [{transform_indices = @transform_0, window_bounds = array<i64: 2, 4, 256>}, {pipeline_mode = #tpu.pipeline_mode<synchronous>, transform_indices = @transform_1, window_bounds = array<i64: 4, 128>}, {pipeline_mode = #tpu.pipeline_mode<synchronous>, transform_indices = @transform_2, window_bounds = array<i64: 1, 128>}, {pipeline_mode = #tpu.pipeline_mode<synchronous>, transform_indices = @transform_3, window_bounds = array<i64: 128, 128>}, {pipeline_mode = #tpu.pipeline_mode<synchronous>, transform_indices = @transform_4, window_bounds = array<i64: 1, 128>}, {transform_indices = @transform_5, window_bounds = array<i64: 2, 128>}]} {
    %c0 = arith.constant 0 : index
    %c0_0 = arith.constant 0 : index
    %c0_1 = arith.constant 0 : index
    %0 = vector.load %arg1[%c0, %c0_0, %c0_1] : memref<2x4x256xf32, #tpu.memory_space<vmem>>, vector<2x4x256xf32>
    %cst = arith.constant dense<0.000000e+00> : vector<2x4xf32>
    %1 = vector.multi_reduction <add>, %0, %cst [2] : vector<2x4x256xf32> to vector<2x4xf32>
    %c0_2 = arith.constant 0 : index
    %c0_3 = arith.constant 0 : index
    %2 = vector.load %arg2[%c0_2, %c0_3] : memref<4x128xf32, #tpu.memory_space<vmem>>, vector<4x128xf32>
    %cst_4 = arith.constant dense<0.000000e+00> : vector<2x128xf32>
    %3 = tpu.matmul %1, %2, %cst_4 {dimension_numbers = #tpu.dot_dimension_numbers<[1], [0], [0], [1], [0, 0, 1, 1], [], []>} : vector<2x4xf32>, vector<4x128xf32>, vector<2x128xf32> -> vector<2x128xf32>
    %c0_5 = arith.constant 0 : index
    %c0_6 = arith.constant 0 : index
    %4 = vector.load %arg3[%c0_5, %c0_6] : memref<1x128xf32, #tpu.memory_space<vmem>>, vector<1x128xf32>
    %5 = vector.broadcast %4 : vector<1x128xf32> to vector<2x128xf32>
    %6 = arith.addf %3, %5 : vector<2x128xf32>
    %cst_7 = arith.constant 0.000000e+00 : f32
    %7 = vector.broadcast %cst_7 : f32 to vector<2x128xf32>
    %8 = arith.maximumf %6, %7 : vector<2x128xf32>
    %c0_8 = arith.constant 0 : index
    %c0_9 = arith.constant 0 : index
    %9 = vector.load %arg4[%c0_8, %c0_9] : memref<128x128xf32, #tpu.memory_space<vmem>>, vector<128x128xf32>
    %cst_10 = arith.constant dense<0.000000e+00> : vector<2x128xf32>
    %10 = tpu.matmul %8, %9, %cst_10 {dimension_numbers = #tpu.dot_dimension_numbers<[1], [0], [0], [1], [0, 0, 1, 1], [], []>} : vector<2x128xf32>, vector<128x128xf32>, vector<2x128xf32> -> vector<2x128xf32>
    %c0_11 = arith.constant 0 : index
    %c0_12 = arith.constant 0 : index
    %11 = vector.load %arg5[%c0_11, %c0_12] : memref<1x128xf32, #tpu.memory_space<vmem>>, vector<1x128xf32>
    %12 = vector.broadcast %11 : vector<1x128xf32> to vector<2x128xf32>
    %13 = arith.addf %10, %12 : vector<2x128xf32>
    %c0_13 = arith.constant 0 : index
    %c0_14 = arith.constant 0 : index
    %14 = vector.load %arg6[%c0_13, %c0_14] : memref<2x128xf32, #tpu.memory_space<vmem>>, vector<2x128xf32>
    tpu.vector_store %arg6[%c0_13, %c0_14], %13 {strides = array<i32>} : memref<2x128xf32, #tpu.memory_space<vmem>>, vector<2x128xf32>,
    return
  }
  func.func @transform_0(%arg0: i32) -> (i32, i32, i32) {
    %c0_i32 = arith.constant 0 : i32
    %c0_i32_0 = arith.constant 0 : i32
    %c0_i32_1 = arith.constant 0 : i32
    return %arg0, %c0_i32, %c0_i32_0 : i32, i32, i32
  }
  func.func @transform_1(%arg0: i32) -> (i32, i32) {
    %c0_i32 = arith.constant 0 : i32
    %c0_i32_0 = arith.constant 0 : i32
    %c0_i32_1 = arith.constant 0 : i32
    return %c0_i32, %c0_i32_0 : i32, i32
  }
  func.func @transform_2(%arg0: i32) -> (i32, i32) {
    %c0_i32 = arith.constant 0 : i32
    %c0_i32_0 = arith.constant 0 : i32
    %c0_i32_1 = arith.constant 0 : i32
    return %c0_i32, %c0_i32_0 : i32, i32
  }
  func.func @transform_3(%arg0: i32) -> (i32, i32) {
    %c0_i32 = arith.constant 0 : i32
    %c0_i32_0 = arith.constant 0 : i32
    %c0_i32_1 = arith.constant 0 : i32
    return %c0_i32, %c0_i32_0 : i32, i32
  }
  func.func @transform_4(%arg0: i32) -> (i32, i32) {
    %c0_i32 = arith.constant 0 : i32
    %c0_i32_0 = arith.constant 0 : i32
    %c0_i32_1 = arith.constant 0 : i32
    return %c0_i32, %c0_i32_0 : i32, i32
  }
  func.func @transform_5(%arg0: i32) -> (i32, i32) {
    %c0_i32 = arith.constant 0 : i32
    %c0_i32_0 = arith.constant 0 : i32
    return %arg0, %c0_i32 : i32, i32
  }
}

module attributes {stable_mosaic.version = 11 : i64} {
  func.func @ensemble_kernel(%arg0: i32, %arg1: memref<2x4x256xf32, #tpu.memory_space<vmem>>, %arg2: memref<4x128xf32, #tpu.memory_space<vmem>>, %arg3: memref<1x128xf32, #tpu.memory_space<vmem>>, %arg4: memref<128x128xf32, #tpu.memory_space<vmem>>, %arg5: memref<1x128xf32, #tpu.memory_space<vmem>>, %arg6: memref<2x128xf32, #tpu.memory_space<vmem>>) attributes {dimension_semantics = [#tpu.dimension_semantics<parallel>], iteration_bounds = array<i64: 1>, scalar_prefetch = 0 : i64, scratch_operands = 0 : i64, tpu.core_type = #tpu.core_type<tc>, window_params = [{transform_indices = @transform_0, window_bounds = array<i64: 2, 4, 256>}, {pipeline_mode = #tpu.pipeline_mode<synchronous>, transform_indices = @transform_1, window_bounds = array<i64: 4, 128>}, {pipeline_mode = #tpu.pipeline_mode<synchronous>, transform_indices = @transform_2, window_bounds = array<i64: 1, 128>}, {pipeline_mode = #tpu.pipeline_mode<synchronous>, transform_indices = @transform_3, window_bounds = array<i64: 128, 128>}, {pipeline_mode = #tpu.pipeline_mode<synchronous>, transform_indices = @transform_4, window_bounds = array<i64: 1, 128>}, {transform_indices = @transform_5, window_bounds = array<i64: 2, 128>}]} {
    %c0 = arith.constant 0 : index
    %c0_0 = arith.constant 0 : index
    %c0_1 = arith.constant 0 : index
    %0 = vector.load %arg1[%c0, %c0_0, %c0_1] : memref<2x4x256xf32, #tpu.memory_space<vmem>>, vector<2x4x256xf32>
    %cst = arith.constant dense<0.000000e+00> : vector<2x4xf32>
    %1 = vector.multi_reduction <add>, %0, %cst [2] : vector<2x4x256xf32> to vector<2x4xf32>
    %c0_2 = arith.constant 0 : index
    %c0_3 = arith.constant 0 : index
    %2 = vector.load %arg2[%c0_2, %c0_3] : memref<4x128xf32, #tpu.memory_space<vmem>>, vector<4x128xf32>
    %cst_4 = arith.constant dense<0.000000e+00> : vector<2x128xf32>
    %3 = tpu.matmul %1, %2, %cst_4 {dimension_numbers = #tpu.dot_dimension_numbers<[1], [0], [0], [1], [0, 0, 1, 1], [], []>} : vector<2x4xf32>, vector<4x128xf32>, vector<2x128xf32> -> vector<2x128xf32>
    %c0_5 = arith.constant 0 : index
    %c0_6 = arith.constant 0 : index
    %4 = vector.load %arg3[%c0_5, %c0_6] : memref<1x128xf32, #tpu.memory_space<vmem>>, vector<1x128xf32>
    %5 = vector.broadcast %4 : vector<1x128xf32> to vector<2x128xf32>
    %6 = arith.addf %3, %5 : vector<2x128xf32>
    %cst_7 = arith.constant 0.000000e+00 : f32
    %7 = vector.broadcast %cst_7 : f32 to vector<2x128xf32>
    %8 = arith.maximumf %6, %7 : vector<2x128xf32>
    %c0_8 = arith.constant 0 : index
    %c0_9 = arith.constant 0 : index
    %9 = vector.load %arg4[%c0_8, %c0_9] : memref<128x128xf32, #tpu.memory_space<vmem>>, vector<128x128xf32>
    %cst_10 = arith.constant dense<0.000000e+00> : vector<2x128xf32>
    %10 = tpu.matmul %8, %9, %cst_10 {dimension_numbers = #tpu.dot_dimension_numbers<[1], [0], [0], [1], [0, 0, 1, 1], [], []>} : vector<2x128xf32>, vector<128x128xf32>, vector<2x128xf32> -> vector<2x128xf32>
    %c0_11 = arith.constant 0 : index
    %c0_12 = arith.constant 0 : index
    %11 = vector.load %arg5[%c0_11, %c0_12] : memref<1x128xf32, #tpu.memory_space<vmem>>, vector<1x128xf32>
    %12 = vector.broadcast %11 : vector<1x128xf32> to vector<2x128xf32>
    %13 = arith.addf %10, %12 : vector<2x128xf32>
    %c0_13 = arith.constant 0 : index
    %c0_14 = arith.constant 0 : index
    %14 = vector.load %arg6[%c0_13, %c0_14] : memref<2x128xf32, #tpu.memory_space<vmem>>, vector<2x128xf32>
    tpu.vector_store %arg6[%c0_13, %c0_14], %13 {strides = array<i32>} : memref<2x128xf32, #tpu.memory_space<vmem>>, vector<2x128xf32>,
    return
  }
  func.func @transform_0(%arg0: i32) -> (i32, i32, i32) {
    %c0_i32 = arith.constant 0 : i32
    %c0_i32_0 = arith.constant 0 : i32
    %c0_i32_1 = arith.constant 0 : i32
    return %arg0, %c0_i32, %c0_i32_0 : i32, i32, i32
  }
  func.func @transform_1(%arg0: i32) -> (i32, i32) {
    %c0_i32 = arith.constant 0 : i32
    %c0_i32_0 = arith.constant 0 : i32
    %c0_i32_1 = arith.constant 0 : i32
    return %c0_i32, %c0_i32_0 : i32, i32
  }
  func.func @transform_2(%arg0: i32) -> (i32, i32) {
    %c0_i32 = arith.constant 0 : i32
    %c0_i32_0 = arith.constant 0 : i32
    %c0_i32_1 = arith.constant 0 : i32
    return %c0_i32, %c0_i32_0 : i32, i32
  }
  func.func @transform_3(%arg0: i32) -> (i32, i32) {
    %c0_i32 = arith.constant 0 : i32
    %c0_i32_0 = arith.constant 0 : i32
    %c0_i32_1 = arith.constant 0 : i32
    return %c0_i32, %c0_i32_0 : i32, i32
  }
  func.func @transform_4(%arg0: i32) -> (i32, i32) {
    %c0_i32 = arith.constant 0 : i32
    %c0_i32_0 = arith.constant 0 : i32
    %c0_i32_1 = arith.constant 0 : i32
    return %c0_i32, %c0_i32_0 : i32, i32
  }
  func.func @transform_5(%arg0: i32) -> (i32, i32) {
    %c0_i32 = arith.constant 0 : i32
    %c0_i32_0 = arith.constant 0 : i32
    return %arg0, %c0_i32 : i32, i32
  }
}

</mosaic_0001>

<bundles_post_ra>
// kernel: tpu_custom_call.1
= control target key start
LH: loop header
LB: loop body
LE: loop exit
PB: predicated region body
PF: predicated region fallthrough
CT: control target
= control target key end

     0   :  { %10 = vsyncpa [#allocation3], 0  ;;  %s585_s0 = inlined_call_operand.hbm [shape: f32[2,4,256], index: 0, kind: input, shape index: {}]   ;;  %s586_s1 = inlined_call_operand.hbm [shape: f32[4,128], index: 1, kind: input, shape index: {}]   ;;  %s587_s2 = inlined_call_operand.vmem [shape: f32[1,128], index: 2, kind: input, shape index: {}]   ;;  %s588_s3 = inlined_call_operand.hbm [shape: f32[128,128], index: 3, kind: input, shape index: {}]   ;;  %s589_s4 = inlined_call_operand.vmem [shape: f32[1,128], index: 4, kind: input, shape index: {}]   ;;  %s590_s5 = inlined_call_operand.hbm [shape: f32[2,128], index: 5, kind: output, shape index: {}]  }
   0x1   :  { %11 = vsyncpa [#allocation6], 0 }
   0x2   :  { %12 = vsyncpa [#allocation4], 0  ;;  %s480_s18 = smov [#allocation5]   ;;  %s481_s20 = smov [#allocation2]  }
   0x3   :  { %s31_s19 = sshll.u32 %s480_s18, 4  ;;  %s18_s21 = sshll.u32 %s481_s20, 4  ;;  %s32_s19 = int_to_ptr.vmem [resolvable:$true] %s31_s19  ;;  %s519_s21 = int_to_ptr.vmem [resolvable:$true] %s18_s21 }
   0x4   :  { %s386_s24 = scalar_lea.hbm %s586_s1, 64 }
   0x5   :  { %p387_p0 = scmp.ne.s32.totalorder %s586_s1, %s386_s24  ;;  %p390_p1 = scmp.lt.u32.totalorder %s386_s24, %s586_s1 }
   0x7   :  { %p392_p2 = pnand %p390_p1, %p387_p0 }
   0x9   :  { %395 = shalt.err (!%p392_p2)
}
   0xa   :  { %s396_s29 = scalar_lea.vmem %s32_s19, 64  ;;  %p401_p4 = scmp.lt.s32.totalorder %s32_s19, %s32_s19 }
   0xb   :  { %p397_p3 = scmp.ne.s32.totalorder %s32_s19, %s396_s29  ;;  %p402_p5 = scmp.lt.s32.totalorder %s396_s29, %s396_s29 }
   0xd   :  { %p403_p6 = por %p402_p5, %p401_p4 }
   0xf   :  { %p404_p7 = pnand %p403_p6, %p397_p3 }
  0x11   :  { %407 = shalt.err (!%p404_p7)
}
  0x12   :  { %34 = dma.hbm_to_vmem [thread:$0]  %s586_s1, 64, %s32_s19, [#allocation6]  }
  0x13   :  { %s408_s9 = scalar_lea.hbm %s585_s0, 256 }
  0x14   :  { %p409_p8 = scmp.ne.s32.totalorder %s585_s0, %s408_s9  ;;  %p412_p9 = scmp.lt.u32.totalorder %s408_s9, %s585_s0 }
  0x16   :  { %p414_p10 = pnand %p412_p9, %p409_p8 }
  0x18   :  { %417 = shalt.err (!%p414_p10)
}
  0x19   :  { %s418_s14 = scalar_lea.vmem %s519_s21, 256  ;;  %p423_p12 = scmp.lt.s32.totalorder %s519_s21, %s519_s21 }
  0x1a   :  { %p419_p11 = scmp.ne.s32.totalorder %s519_s21, %s418_s14  ;;  %p424_p13 = scmp.lt.s32.totalorder %s418_s14, %s418_s14 }
  0x1c   :  { %p425_p0 = por %p424_p13, %p423_p12 }
  0x1e   :  { %p426_p1 = pnand %p425_p0, %p419_p11 }
  0x20   :  { %429 = shalt.err (!%p426_p1)
}
  0x21   :  { %s482_s1 = smov 128   ;;  %s483_s15 = smov 8  }
  0x22   :  { %24 = dma.hbm_to_vmem [thread:$0]  %s585_s0, 256, %s519_s21, [#allocation3], %s482_s1, %s482_s1, %s483_s15  }
  0x23   :  { %s484_s18 = smov [#allocation7]   ;;  %s430_s23 = scalar_lea.hbm %s588_s3, 2048 }
  0x24   :  { %s42_s19 = sshll.u32 %s484_s18, 4  ;;  %p431_p2 = scmp.ne.s32.totalorder %s588_s3, %s430_s23  ;;  %s43_s19 = int_to_ptr.vmem [resolvable:$true] %s42_s19 }
  0x25   :  { %p434_p3 = scmp.lt.u32.totalorder %s430_s23, %s588_s3 }
  0x27   :  { %p436_p4 = pnand %p434_p3, %p431_p2 }
  0x29   :  { %439 = shalt.err (!%p436_p4)
}
  0x2a   :  { %s440_s28 = scalar_lea.vmem %s43_s19, 2048  ;;  %p445_p6 = scmp.lt.s32.totalorder %s43_s19, %s43_s19 }
  0x2b   :  { %p441_p5 = scmp.ne.s32.totalorder %s43_s19, %s440_s28  ;;  %p446_p7 = scmp.lt.s32.totalorder %s440_s28, %s440_s28 }
  0x2d   :  { %p447_p8 = por %p446_p7, %p445_p6 }
  0x2f   :  { %p448_p9 = pnand %p447_p8, %p441_p5 }
  0x31   :  { %451 = shalt.err (!%p448_p9)
}
  0x32   :  { %48 = dma.hbm_to_vmem [thread:$0]  %s588_s3, 2048, %s43_s19, [#allocation6], %s482_s1, %s482_s1, %s483_s15  }
  0x33   :  { %474 = dma.done.wait [#allocation3], 256  }
  0x34   :  { %475 = vsyncadd [#allocation3], 4294967040 }
  0x35   :  { %476 = dma.done.wait [#allocation6], 2112  }
  0x36   :  { %477 = vsyncadd [#allocation6], 4294965184  ;;  %vm68_vm0 = vcmask 1043456   ;;  %v60_v0 = vld [vmem:[#allocation2] sm:$0xff]  ;;  %v61_v1 = vld [vmem:[#allocation2 + $0x8] sm:$0xff]  ;;  %v485_v11 = vmov 0.0   ;;  %v89_v34 = vlaneseq }
  0x37   :  { %v64_v2 = vcombine.high %v60_v0, %v60_v0  ;;  %v69_v3 = vsel %vm68_vm0, %v60_v0, 0.0  ;;  %v65_v4 = vcombine.high %v61_v1, %v61_v1  ;;  %v74_v6 = vsel %vm68_vm0, %v61_v1, 0.0  ;;  %v79_v10 = vld [vmem:[#allocation5] sm:$0xf]  ;;  %311 = vmatprep.subr.mxu0 %v485_v11  ;;  %v178_v12 = vld [vmem:[#allocation7] sm:$0xff]  ;;  %v179_v13 = vld [vmem:[#allocation7 + $0x8] sm:$0xff] }
  0x38   :  { %vm486_vm1 = vmmov 0   ;;  %312 = vmatpush3.msk.msra.mxu0 %vm68_vm0, %v79_v10  ;;  %v180_v14 = vld [vmem:[#allocation7 + $0x10] sm:$0xff]  ;;  %v487_v15 = vmov 0.0|0.0   ;;  %v352_v16 = vpack.c.bf16 %v179_v13, %v178_v12  ;;  %v181_v17 = vld [vmem:[#allocation7 + $0x18] sm:$0xff]  ;;  %v182_v19 = vld [vmem:[#allocation7 + $0x20] sm:$0xff]  ;;  %v90_v35 = vand.u32 127, %v89_v34 }
  0x39   :  { %v70_v5 = vsel %vm68_vm0, %v64_v2, 0.0  ;;  %v75_v7 = vsel %vm68_vm0, %v65_v4, 0.0  ;;  %313 = vmatprep.mubr.msk.f32.mxu0 %vm486_vm1, %v485_v11  ;;  %348 = vmatprep.mubr.msk.f32.mxu1 %vm486_vm1, %v485_v11  ;;  %v355_v18 = vpack.c.bf16 %v181_v17, %v180_v14  ;;  %v183_v20 = vld [vmem:[#allocation7 + $0x28] sm:$0xff]  ;;  %v184_v22 = vld [vmem:[#allocation7 + $0x30] sm:$0xff]  ;;  %v185_v23 = vld [vmem:[#allocation7 + $0x38] sm:$0xff]  ;;  %v92_v36 = vshrl.u32 %v89_v34, 7 }
  0x3a   :  { %v71_v8 = vadd.f32 %v70_v5, %v69_v3  ;;  %v76_v9 = vadd.f32 %v75_v7, %v74_v6  ;;  %351 = vmatprep.subr.bf16.mxu1 %v487_v15  ;;  %v358_v21 = vpack.c.bf16 %v183_v20, %v182_v19  ;;  %v361_v24 = vpack.c.bf16 %v185_v23, %v184_v22  ;;  %v186_v25 = vld [vmem:[#allocation7 + $0x40] sm:$0xff]  ;;  %v187_v26 = vld [vmem:[#allocation7 + $0x48] sm:$0xff]  ;;  %v188_v28 = vld [vmem:[#allocation7 + $0x50] sm:$0xff]  ;;  %s488_s7 = smov [#allocation8]  }
  0x3b   :  { %353 = vmatpush3.bf16.msra.mxu1 %v352_v16  ;;  %v364_v27 = vpack.c.bf16 %v187_v26, %v186_v25  ;;  %v189_v29 = vld [vmem:[#allocation7 + $0x58] sm:$0xff]  ;;  %v190_v31 = vld [vmem:[#allocation7 + $0x60] sm:$0xff]  ;;  %v191_v32 = vld [vmem:[#allocation7 + $0x68] sm:$0xff]  ;;  %v93_v38 = vsub.s32 %v90_v35, %v92_v36  ;;  %vm99_vm2 = vcmask 1041409   ;;  %vm101_vm3 = vcmask 31744   ;;  %s278_s8 = sshll.u32 %s488_s7, 4  ;;  %s279_s8 = int_to_ptr.vmem [resolvable:$true] %s278_s8 }
  0x3c   :  { %72 = vadd.xlane.f32.xlu0 %v71_v8  ;;  %354 = vmatprep.subr.bf16.mxu1 %v487_v15  ;;  %v367_v30 = vpack.c.bf16 %v189_v29, %v188_v28  ;;  %v370_v33 = vpack.c.bf16 %v191_v32, %v190_v31  ;;  %v192_v43 = vld [vmem:[#allocation7 + $0x70] sm:$0xff]  ;;  %v193_v44 = vld [vmem:[#allocation7 + $0x78] sm:$0xff]  ;;  %v288_v46 = vld [vmem:[%s587_s2] ss:$0 sm:$0xff]  ;;  %s452_s9 = scalar_lea.vmem %s279_s8, 32  ;;  %p457_p11 = scmp.lt.s32.totalorder %s279_s8, %s279_s8 }
  0x3d   :  { %v373_v45 = vpack.c.bf16 %v193_v44, %v192_v43  ;;  %v291_v51 = vld [vmem:[%s589_s4] ss:$0 sm:$0xff]  ;;  %p453_p10 = scmp.ne.s32.totalorder %s279_s8, %s452_s9  ;;  %p458_p12 = scmp.lt.s32.totalorder %s452_s9, %s452_s9 }
  0x3f   :  { %356 = vmatpush3.bf16.msra.mxu1 %v355_v18  ;;  %p459_p13 = por %p458_p12, %p457_p11 }
  0x40   :  { %77 = vadd.xlane.f32.xlu0 %v76_v9  ;;  %357 = vmatprep.subr.bf16.mxu1 %v487_v15 }
  0x41   :  { %p460_p0 = pnand %p459_p13, %p453_p10 }
  0x43   :  { %359 = vmatpush3.bf16.msra.mxu1 %v358_v21 }
  0x44   :  { %360 = vmatprep.subr.bf16.mxu1 %v487_v15 }
  0x47   :  { %362 = vmatpush3.bf16.msra.mxu1 %v361_v24 }
  0x48   :  { %363 = vmatprep.subr.bf16.mxu1 %v487_v15 }
  0x4b   :  { %365 = vmatpush3.bf16.msra.mxu1 %v364_v27 }
  0x4c   :  { %366 = vmatprep.subr.bf16.mxu1 %v487_v15 }
  0x4f   :  { %368 = vmatpush3.bf16.msra.mxu1 %v367_v30 }
  0x50   :  { %369 = vmatprep.subr.bf16.mxu1 %v487_v15 }
  0x53   :  { %371 = vmatpush3.bf16.msra.mxu1 %v370_v33 }
  0x54   :  { %372 = vmatprep.subr.bf16.mxu1 %v487_v15 }
  0x57   :  { %374 = vmatpush3.bf16.msra.mxu1 %v373_v45 }
  0xc9   :  { %v73_v37 = vpop.xlane.xlu0 %72 }
  0xca   :  { %v94_v40 = vrot.slane %v73_v37, %v93_v38 }
  0xcd   :  { %v78_v39 = vpop.xlane.xlu0 %77 }
  0xce   :  { %v98_v41 = vrot.slane %v78_v39, %v93_v38 }
  0xd0   :  { %v100_v42 = vsel %vm99_vm2, %v98_v41, %v94_v40 }
  0xd1   :  { %314 = vmatmul.mubr.msk.f32.vlgmr.msra.gmra.mrb[0].mxu0 %vm101_vm3, %v100_v42 }
 0x1a4   :  { %v173_v47 = vpop.f32.mrb[0].mxu0 }
 0x1a5   :  { %v174_v48 = vadd.f32 %v288_v46, %v173_v47  ;;  %v315_v49 = vpop.f32.mrb[1].mxu0 }
 0x1a7   :  { %v177_v50 = vmax.f32 %v174_v48, 0.0 }
 0x1a9   :  { %349 = vmatmul.mubr.f32.vlgmr.msra.gmra.mrb[0].mxu1 %v177_v50 }
 0x27c   :  { %v267_v52 = vpop.f32.mrb[0].mxu1 }
 0x27d   :  { %v268_v53 = vadd.f32 %v291_v51, %v267_v52  ;;  %v350_v54 = vpop.f32.mrb[1].mxu1 }
 0x27f   :  { %271 = vst [vmem:[#allocation8] sm:$0x3] %v268_v53 }
 0x280   :  { %463 = shalt.err (!%p460_p0)
}
 0x281   :  { %s464_s11 = scalar_lea.hbm %s590_s5, 32 }
 0x282   :  { %p465_p1 = scmp.ne.s32.totalorder %s590_s5, %s464_s11  ;;  %p468_p2 = scmp.lt.u32.totalorder %s464_s11, %s590_s5 }
 0x284   :  { %p470_p3 = pnand %p468_p2, %p465_p1 }
 0x286   :  { %473 = shalt.err (!%p470_p3)
}
 0x287   :  { %281 = dma.vmem_to_hbm [thread:$0]  %s279_s8, 32, %s590_s5, [#allocation4]  }
 0x288   :  { %478 = dma.done.wait [#allocation4], 32  }
 0x289   :  { %479 = vsyncadd [#allocation4], 4294967264 }
 0x28a   :  { %285 = vsyncpa [#allocation3], 1 }
 0x28b   :  { %286 = vsyncpa [#allocation6], 1 }
 0x28c   :  { %287 = vsyncpa [#allocation4], 1 }

// kernel: tpu_custom_call.1
= control target key start
LH: loop header
LB: loop body
LE: loop exit
PB: predicated region body
PF: predicated region fallthrough
CT: control target
= control target key end

     0   :  { %10 = vsyncpa [#allocation3], 0  ;;  %s585_s0 = inlined_call_operand.hbm [shape: f32[2,4,256], index: 0, kind: input, shape index: {}]   ;;  %s586_s1 = inlined_call_operand.hbm [shape: f32[4,128], index: 1, kind: input, shape index: {}]   ;;  %s587_s2 = inlined_call_operand.vmem [shape: f32[1,128], index: 2, kind: input, shape index: {}]   ;;  %s588_s3 = inlined_call_operand.hbm [shape: f32[128,128], index: 3, kind: input, shape index: {}]   ;;  %s589_s4 = inlined_call_operand.vmem [shape: f32[1,128], index: 4, kind: input, shape index: {}]   ;;  %s590_s5 = inlined_call_operand.hbm [shape: f32[2,128], index: 5, kind: output, shape index: {}]  }
   0x1   :  { %11 = vsyncpa [#allocation6], 0 }
   0x2   :  { %12 = vsyncpa [#allocation4], 0  ;;  %s480_s18 = smov [#allocation5]   ;;  %s481_s20 = smov [#allocation2]  }
   0x3   :  { %s31_s19 = sshll.u32 %s480_s18, 4  ;;  %s18_s21 = sshll.u32 %s481_s20, 4  ;;  %s32_s19 = int_to_ptr.vmem [resolvable:$true] %s31_s19  ;;  %s519_s21 = int_to_ptr.vmem [resolvable:$true] %s18_s21 }
   0x4   :  { %s386_s24 = scalar_lea.hbm %s586_s1, 64 }
   0x5   :  { %p387_p0 = scmp.ne.s32.totalorder %s586_s1, %s386_s24  ;;  %p390_p1 = scmp.lt.u32.totalorder %s386_s24, %s586_s1 }
   0x7   :  { %p392_p2 = pnand %p390_p1, %p387_p0 }
   0x9   :  { %395 = shalt.err (!%p392_p2)
}
   0xa   :  { %s396_s29 = scalar_lea.vmem %s32_s19, 64  ;;  %p401_p4 = scmp.lt.s32.totalorder %s32_s19, %s32_s19 }
   0xb   :  { %p397_p3 = scmp.ne.s32.totalorder %s32_s19, %s396_s29  ;;  %p402_p5 = scmp.lt.s32.totalorder %s396_s29, %s396_s29 }
   0xd   :  { %p403_p6 = por %p402_p5, %p401_p4 }
   0xf   :  { %p404_p7 = pnand %p403_p6, %p397_p3 }
  0x11   :  { %407 = shalt.err (!%p404_p7)
}
  0x12   :  { %34 = dma.hbm_to_vmem [thread:$0]  %s586_s1, 64, %s32_s19, [#allocation6]  }
  0x13   :  { %s408_s9 = scalar_lea.hbm %s585_s0, 256 }
  0x14   :  { %p409_p8 = scmp.ne.s32.totalorder %s585_s0, %s408_s9  ;;  %p412_p9 = scmp.lt.u32.totalorder %s408_s9, %s585_s0 }
  0x16   :  { %p414_p10 = pnand %p412_p9, %p409_p8 }
  0x18   :  { %417 = shalt.err (!%p414_p10)
}
  0x19   :  { %s418_s14 = scalar_lea.vmem %s519_s21, 256  ;;  %p423_p12 = scmp.lt.s32.totalorder %s519_s21, %s519_s21 }
  0x1a   :  { %p419_p11 = scmp.ne.s32.totalorder %s519_s21, %s418_s14  ;;  %p424_p13 = scmp.lt.s32.totalorder %s418_s14, %s418_s14 }
  0x1c   :  { %p425_p0 = por %p424_p13, %p423_p12 }
  0x1e   :  { %p426_p1 = pnand %p425_p0, %p419_p11 }
  0x20   :  { %429 = shalt.err (!%p426_p1)
}
  0x21   :  { %s482_s1 = smov 128   ;;  %s483_s15 = smov 8  }
  0x22   :  { %24 = dma.hbm_to_vmem [thread:$0]  %s585_s0, 256, %s519_s21, [#allocation3], %s482_s1, %s482_s1, %s483_s15  }
  0x23   :  { %s484_s18 = smov [#allocation7]   ;;  %s430_s23 = scalar_lea.hbm %s588_s3, 2048 }
  0x24   :  { %s42_s19 = sshll.u32 %s484_s18, 4  ;;  %p431_p2 = scmp.ne.s32.totalorder %s588_s3, %s430_s23  ;;  %s43_s19 = int_to_ptr.vmem [resolvable:$true] %s42_s19 }
  0x25   :  { %p434_p3 = scmp.lt.u32.totalorder %s430_s23, %s588_s3 }
  0x27   :  { %p436_p4 = pnand %p434_p3, %p431_p2 }
  0x29   :  { %439 = shalt.err (!%p436_p4)
}
  0x2a   :  { %s440_s28 = scalar_lea.vmem %s43_s19, 2048  ;;  %p445_p6 = scmp.lt.s32.totalorder %s43_s19, %s43_s19 }
  0x2b   :  { %p441_p5 = scmp.ne.s32.totalorder %s43_s19, %s440_s28  ;;  %p446_p7 = scmp.lt.s32.totalorder %s440_s28, %s440_s28 }
  0x2d   :  { %p447_p8 = por %p446_p7, %p445_p6 }
  0x2f   :  { %p448_p9 = pnand %p447_p8, %p441_p5 }
  0x31   :  { %451 = shalt.err (!%p448_p9)
}
  0x32   :  { %48 = dma.hbm_to_vmem [thread:$0]  %s588_s3, 2048, %s43_s19, [#allocation6], %s482_s1, %s482_s1, %s483_s15  }
  0x33   :  { %474 = dma.done.wait [#allocation3], 256  }
  0x34   :  { %475 = vsyncadd [#allocation3], 4294967040 }
  0x35   :  { %476 = dma.done.wait [#allocation6], 2112  }
  0x36   :  { %477 = vsyncadd [#allocation6], 4294965184  ;;  %vm68_vm0 = vcmask 1043456   ;;  %v60_v0 = vld [vmem:[#allocation2] sm:$0xff]  ;;  %v61_v1 = vld [vmem:[#allocation2 + $0x8] sm:$0xff]  ;;  %v485_v11 = vmov 0.0   ;;  %v89_v34 = vlaneseq }
  0x37   :  { %v64_v2 = vcombine.high %v60_v0, %v60_v0  ;;  %v69_v3 = vsel %vm68_vm0, %v60_v0, 0.0  ;;  %v65_v4 = vcombine.high %v61_v1, %v61_v1  ;;  %v74_v6 = vsel %vm68_vm0, %v61_v1, 0.0  ;;  %v79_v10 = vld [vmem:[#allocation5] sm:$0xf]  ;;  %311 = vmatprep.subr.mxu0 %v485_v11  ;;  %v178_v12 = vld [vmem:[#allocation7] sm:$0xff]  ;;  %v179_v13 = vld [vmem:[#allocation7 + $0x8] sm:$0xff] }
  0x38   :  { %vm486_vm1 = vmmov 0   ;;  %312 = vmatpush3.msk.msra.mxu0 %vm68_vm0, %v79_v10  ;;  %v180_v14 = vld [vmem:[#allocation7 + $0x10] sm:$0xff]  ;;  %v487_v15 = vmov 0.0|0.0   ;;  %v352_v16 = vpack.c.bf16 %v179_v13, %v178_v12  ;;  %v181_v17 = vld [vmem:[#allocation7 + $0x18] sm:$0xff]  ;;  %v182_v19 = vld [vmem:[#allocation7 + $0x20] sm:$0xff]  ;;  %v90_v35 = vand.u32 127, %v89_v34 }
  0x39   :  { %v70_v5 = vsel %vm68_vm0, %v64_v2, 0.0  ;;  %v75_v7 = vsel %vm68_vm0, %v65_v4, 0.0  ;;  %313 = vmatprep.mubr.msk.f32.mxu0 %vm486_vm1, %v485_v11  ;;  %348 = vmatprep.mubr.msk.f32.mxu1 %vm486_vm1, %v485_v11  ;;  %v355_v18 = vpack.c.bf16 %v181_v17, %v180_v14  ;;  %v183_v20 = vld [vmem:[#allocation7 + $0x28] sm:$0xff]  ;;  %v184_v22 = vld [vmem:[#allocation7 + $0x30] sm:$0xff]  ;;  %v185_v23 = vld [vmem:[#allocation7 + $0x38] sm:$0xff]  ;;  %v92_v36 = vshrl.u32 %v89_v34, 7 }
  0x3a   :  { %v71_v8 = vadd.f32 %v70_v5, %v69_v3  ;;  %v76_v9 = vadd.f32 %v75_v7, %v74_v6  ;;  %351 = vmatprep.subr.bf16.mxu1 %v487_v15  ;;  %v358_v21 = vpack.c.bf16 %v183_v20, %v182_v19  ;;  %v361_v24 = vpack.c.bf16 %v185_v23, %v184_v22  ;;  %v186_v25 = vld [vmem:[#allocation7 + $0x40] sm:$0xff]  ;;  %v187_v26 = vld [vmem:[#allocation7 + $0x48] sm:$0xff]  ;;  %v188_v28 = vld [vmem:[#allocation7 + $0x50] sm:$0xff]  ;;  %s488_s7 = smov [#allocation8]  }
  0x3b   :  { %353 = vmatpush3.bf16.msra.mxu1 %v352_v16  ;;  %v364_v27 = vpack.c.bf16 %v187_v26, %v186_v25  ;;  %v189_v29 = vld [vmem:[#allocation7 + $0x58] sm:$0xff]  ;;  %v190_v31 = vld [vmem:[#allocation7 + $0x60] sm:$0xff]  ;;  %v191_v32 = vld [vmem:[#allocation7 + $0x68] sm:$0xff]  ;;  %v93_v38 = vsub.s32 %v90_v35, %v92_v36  ;;  %vm99_vm2 = vcmask 1041409   ;;  %vm101_vm3 = vcmask 31744   ;;  %s278_s8 = sshll.u32 %s488_s7, 4  ;;  %s279_s8 = int_to_ptr.vmem [resolvable:$true] %s278_s8 }
  0x3c   :  { %72 = vadd.xlane.f32.xlu0 %v71_v8  ;;  %354 = vmatprep.subr.bf16.mxu1 %v487_v15  ;;  %v367_v30 = vpack.c.bf16 %v189_v29, %v188_v28  ;;  %v370_v33 = vpack.c.bf16 %v191_v32, %v190_v31  ;;  %v192_v43 = vld [vmem:[#allocation7 + $0x70] sm:$0xff]  ;;  %v193_v44 = vld [vmem:[#allocation7 + $0x78] sm:$0xff]  ;;  %v288_v46 = vld [vmem:[%s587_s2] ss:$0 sm:$0xff]  ;;  %s452_s9 = scalar_lea.vmem %s279_s8, 32  ;;  %p457_p11 = scmp.lt.s32.totalorder %s279_s8, %s279_s8 }
  0x3d   :  { %v373_v45 = vpack.c.bf16 %v193_v44, %v192_v43  ;;  %v291_v51 = vld [vmem:[%s589_s4] ss:$0 sm:$0xff]  ;;  %p453_p10 = scmp.ne.s32.totalorder %s279_s8, %s452_s9  ;;  %p458_p12 = scmp.lt.s32.totalorder %s452_s9, %s452_s9 }
  0x3f   :  { %356 = vmatpush3.bf16.msra.mxu1 %v355_v18  ;;  %p459_p13 = por %p458_p12, %p457_p11 }
  0x40   :  { %77 = vadd.xlane.f32.xlu0 %v76_v9  ;;  %357 = vmatprep.subr.bf16.mxu1 %v487_v15 }
  0x41   :  { %p460_p0 = pnand %p459_p13, %p453_p10 }
  0x43   :  { %359 = vmatpush3.bf16.msra.mxu1 %v358_v21 }
  0x44   :  { %360 = vmatprep.subr.bf16.mxu1 %v487_v15 }
  0x47   :  { %362 = vmatpush3.bf16.msra.mxu1 %v361_v24 }
  0x48   :  { %363 = vmatprep.subr.bf16.mxu1 %v487_v15 }
  0x4b   :  { %365 = vmatpush3.bf16.msra.mxu1 %v364_v27 }
  0x4c   :  { %366 = vmatprep.subr.bf16.mxu1 %v487_v15 }
  0x4f   :  { %368 = vmatpush3.bf16.msra.mxu1 %v367_v30 }
  0x50   :  { %369 = vmatprep.subr.bf16.mxu1 %v487_v15 }
  0x53   :  { %371 = vmatpush3.bf16.msra.mxu1 %v370_v33 }
  0x54   :  { %372 = vmatprep.subr.bf16.mxu1 %v487_v15 }
  0x57   :  { %374 = vmatpush3.bf16.msra.mxu1 %v373_v45 }
  0xc9   :  { %v73_v37 = vpop.xlane.xlu0 %72 }
  0xca   :  { %v94_v40 = vrot.slane %v73_v37, %v93_v38 }
  0xcd   :  { %v78_v39 = vpop.xlane.xlu0 %77 }
  0xce   :  { %v98_v41 = vrot.slane %v78_v39, %v93_v38 }
  0xd0   :  { %v100_v42 = vsel %vm99_vm2, %v98_v41, %v94_v40 }
  0xd1   :  { %314 = vmatmul.mubr.msk.f32.vlgmr.msra.gmra.mrb[0].mxu0 %vm101_vm3, %v100_v42 }
 0x1a4   :  { %v173_v47 = vpop.f32.mrb[0].mxu0 }
 0x1a5   :  { %v174_v48 = vadd.f32 %v288_v46, %v173_v47  ;;  %v315_v49 = vpop.f32.mrb[1].mxu0 }
 0x1a7   :  { %v177_v50 = vmax.f32 %v174_v48, 0.0 }
 0x1a9   :  { %349 = vmatmul.mubr.f32.vlgmr.msra.gmra.mrb[0].mxu1 %v177_v50 }
 0x27c   :  { %v267_v52 = vpop.f32.mrb[0].mxu1 }
 0x27d   :  { %v268_v53 = vadd.f32 %v291_v51, %v267_v52  ;;  %v350_v54 = vpop.f32.mrb[1].mxu1 }
 0x27f   :  { %271 = vst [vmem:[#allocation8] sm:$0x3] %v268_v53 }
 0x280   :  { %463 = shalt.err (!%p460_p0)
}
 0x281   :  { %s464_s11 = scalar_lea.hbm %s590_s5, 32 }
 0x282   :  { %p465_p1 = scmp.ne.s32.totalorder %s590_s5, %s464_s11  ;;  %p468_p2 = scmp.lt.u32.totalorder %s464_s11, %s590_s5 }
 0x284   :  { %p470_p3 = pnand %p468_p2, %p465_p1 }
 0x286   :  { %473 = shalt.err (!%p470_p3)
}
 0x287   :  { %281 = dma.vmem_to_hbm [thread:$0]  %s279_s8, 32, %s590_s5, [#allocation4]  }
 0x288   :  { %478 = dma.done.wait [#allocation4], 32  }
 0x289   :  { %479 = vsyncadd [#allocation4], 4294967264 }
 0x28a   :  { %285 = vsyncpa [#allocation3], 1 }
 0x28b   :  { %286 = vsyncpa [#allocation6], 1 }
 0x28c   :  { %287 = vsyncpa [#allocation4], 1 }

</bundles_post_ra>
